<compile_context>
chip_gen: v6e
topology: v6e:2x2x1
jax: 0.10.0
libtpu: 0.0.40
codegen_flags: <defaults>
</compile_context>

<pallas_src>
import jax
import jax.numpy as jnp
from jax.experimental import pallas as pl
from jax.experimental.pallas import tpu as pltpu  # noqa: F401  (kept for TPU-specific tuning hooks)

NUM_FEATS = 21  # hard-coded in the torch module's __init__ (self.num_feats = 21)


def _linear_layer_kernel(x2_ref, pT_ref, wperm_ref, bias_ref, out_ref):
    # x2_ref    : (B*C_in, F)              flattened input  x[b,c,f] -> x2[b*C_in+c, f]
    # pT_ref    : (F, NUM_FEATS)           proj_layers weights, transposed  P[i,f] -> pT[f,i]
    # wperm_ref : (C_in, C_out, NUM_FEATS) layers weights, permuted  W[i,o,c] -> wperm[c,o,i]
    # bias_ref  : (C_out, NUM_FEATS)       folded effective bias  b[i,o]*sum_f P[i,f] + pb[i]
    # out_ref   : (B, C_out, NUM_FEATS)    final PyTorch-layout output
    B, C_out, NF = out_ref.shape
    C_in = wperm_ref.shape[0]

    # Stage 1 (proj refold): y[b*C_in + c, i] = sum_f x[b,c,f] * P[i,f]   — one MXU matmul.
    y = jnp.dot(x2_ref[...], pT_ref[...], preferred_element_type=jnp.float32)  # (B*C_in, NF)

    wperm = wperm_ref[...]   # (C_in, C_out, NF)
    bias = bias_ref[...]     # (C_out, NF)

    # Stage 2 (linear refold): out[b,o,i] = sum_c wperm[c,o,i] * y[b*C_in+c, i] + bias[o,i]
    # B and C_in are small & static -> B*C_in unrolled (C_out, NF) VPU multiply-adds.
    for b in range(B):
        acc = bias
        for c in range(C_in):
            row = b * C_in + c
            acc = acc + wperm[c] * y[row:row + 1, :]        # (C_out,NF) * (1,NF) broadcast
        out_ref[b] = acc.astype(out_ref.dtype)


def linear_layer_forward(x, lin_w, lin_b, proj_w, proj_b):
    """x: (B, C_in, F); lin_w: (21, C_out, C_in); lin_b: (21, C_out);
       proj_w: (21, F); proj_b: (21,).  Returns (B, C_out, 21) float32."""
    B, C_in, F = x.shape
    C_out = lin_w.shape[1]

    # Wrapper-side layout plumbing + bias folding (parameter-sized, exact refold).
    x2 = x.reshape(B * C_in, F)                               # (B*C_in, F)   free reshape
    pT = jnp.transpose(proj_w, (1, 0))                        # (F, 21)
    wperm = jnp.transpose(lin_w, (2, 1, 0))                   # (C_in, C_out, 21)
    psum = jnp.sum(proj_w, axis=1)                            # (21,)  sum_f P[i,f]
    bias_eff = lin_b.T * psum[None, :] + proj_b[None, :]      # (C_out, 21)

    # Single invocation, no grid: every operand is a whole-array VMEM block loaded once
    # (total working set << VMEM on v5e/v6e/v7x); output written back in one DMA.
    return pl.pallas_call(
        _linear_layer_kernel,
        out_shape=jax.ShapeDtypeStruct((B, C_out, NUM_FEATS), jnp.float32),
    )(x2, pT, wperm, bias_eff)


def _reference(x, lin_w, lin_b, proj_w, proj_b):
    """Plain-JAX transcription of the torch forward, for verification."""
    cols = []
    xt = jnp.transpose(x, (0, 2, 1))                                  # (B, F, C_in)
    for i in range(NUM_FEATS):
        out = jnp.einsum("bfc,oc->bfo", xt, lin_w[i]) + lin_b[i]      # layers[i]
        out = jnp.einsum("bof,f->bo", jnp.transpose(out, (0, 2, 1)), proj_w[i]) + proj_b[i]
        cols.append(out)
    return jnp.stack(cols, axis=-1)                                   # (B, C_out, 21)


if __name__ == "__main__":
    # Module: LinearLayer(in_channels=4, out_channels=8, num_feats=5)
    # => x must be (B, in_channels, num_feats) = (2, 4, 5); output is (2, 8, 21).
    B, C_in, C_out, F = 2, 4, 8, 5

    key = jax.random.PRNGKey(0)
    k = jax.random.split(key, 5)
    x = jax.random.normal(k[0], (B, C_in, F), jnp.float32)
    # Deterministic synthetic parameters (shapes from nn.Linear in __init__).
    lin_w = jax.random.normal(k[1], (NUM_FEATS, C_out, C_in), jnp.float32) * 0.1
    lin_b = jax.random.normal(k[2], (NUM_FEATS, C_out), jnp.float32) * 0.1
    proj_w = jax.random.normal(k[3], (NUM_FEATS, F), jnp.float32) * 0.1
    proj_b = jax.random.normal(k[4], (NUM_FEATS,), jnp.float32) * 0.1

    fwd = jax.jit(linear_layer_forward)
    out = jax.block_until_ready(fwd(x, lin_w, lin_b, proj_w, proj_b))
    ref = _reference(x, lin_w, lin_b, proj_w, proj_b)

    assert out.shape == (B, C_out, NUM_FEATS), out.shape
    assert out.dtype == jnp.float32
    # Refold changes FP summation order slightly; 1e-5 tolerance per review guidance.
    assert jnp.allclose(out, ref, atol=1e-5, rtol=1e-5), "mismatch vs. reference"
    print("KERNEL_OK")
</pallas_src>

<mosaic_0001>
module attributes {stable_mosaic.version = 11 : i64} {
  func.func @_linear_layer_kernel(%arg0: memref<8x5xf32, #tpu.memory_space<vmem>>, %arg1: memref<5x21xf32, #tpu.memory_space<vmem>>, %arg2: memref<4x8x21xf32, #tpu.memory_space<vmem>>, %arg3: memref<8x21xf32, #tpu.memory_space<vmem>>, %arg4: memref<2x8x21xf32, #tpu.memory_space<vmem>>) attributes {dimension_semantics = [], scalar_prefetch = 0 : i64, scratch_operands = 0 : i64, tpu.core_type = #tpu.core_type<tc>} {
    %c0 = arith.constant 0 : index
    %c0_0 = arith.constant 0 : index
    %0 = vector.load %arg0[%c0, %c0_0] : memref<8x5xf32, #tpu.memory_space<vmem>>, vector<8x5xf32>
    %c0_1 = arith.constant 0 : index
    %c0_2 = arith.constant 0 : index
    %1 = vector.load %arg1[%c0_1, %c0_2] : memref<5x21xf32, #tpu.memory_space<vmem>>, vector<5x21xf32>
    %cst = arith.constant dense<0.000000e+00> : vector<8x21xf32>
    %2 = tpu.matmul %0, %1, %cst {dimension_numbers = #tpu.dot_dimension_numbers<[1], [0], [0], [1], [0, 0, 1, 1], [], []>} : vector<8x5xf32>, vector<5x21xf32>, vector<8x21xf32> -> vector<8x21xf32>
    %c0_3 = arith.constant 0 : index
    %c0_4 = arith.constant 0 : index
    %c0_5 = arith.constant 0 : index
    %3 = vector.load %arg2[%c0_3, %c0_4, %c0_5] : memref<4x8x21xf32, #tpu.memory_space<vmem>>, vector<4x8x21xf32>
    %c0_6 = arith.constant 0 : index
    %c0_7 = arith.constant 0 : index
    %4 = vector.load %arg3[%c0_6, %c0_7] : memref<8x21xf32, #tpu.memory_space<vmem>>, vector<8x21xf32>
    %5 = vector.extract_strided_slice %3 {offsets = [0, 0, 0], sizes = [1, 8, 21], strides = [1, 1, 1]} : vector<4x8x21xf32> to vector<1x8x21xf32>
    %6 = vector.shape_cast %5 : vector<1x8x21xf32> to vector<8x21xf32>
    %7 = vector.extract_strided_slice %2 {offsets = [0, 0], sizes = [1, 21], strides = [1, 1]} : vector<8x21xf32> to vector<1x21xf32>
    %8 = vector.broadcast %7 : vector<1x21xf32> to vector<8x21xf32>
    %9 = arith.mulf %6, %8 : vector<8x21xf32>
    %10 = arith.addf %4, %9 : vector<8x21xf32>
    %11 = vector.extract_strided_slice %3 {offsets = [1, 0, 0], sizes = [1, 8, 21], strides = [1, 1, 1]} : vector<4x8x21xf32> to vector<1x8x21xf32>
    %12 = vector.shape_cast %11 : vector<1x8x21xf32> to vector<8x21xf32>
    %13 = vector.extract_strided_slice %2 {offsets = [1, 0], sizes = [1, 21], strides = [1, 1]} : vector<8x21xf32> to vector<1x21xf32>
    %14 = vector.broadcast %13 : vector<1x21xf32> to vector<8x21xf32>
    %15 = arith.mulf %12, %14 : vector<8x21xf32>
    %16 = arith.addf %10, %15 : vector<8x21xf32>
    %17 = vector.extract_strided_slice %3 {offsets = [2, 0, 0], sizes = [1, 8, 21], strides = [1, 1, 1]} : vector<4x8x21xf32> to vector<1x8x21xf32>
    %18 = vector.shape_cast %17 : vector<1x8x21xf32> to vector<8x21xf32>
    %19 = vector.extract_strided_slice %2 {offsets = [2, 0], sizes = [1, 21], strides = [1, 1]} : vector<8x21xf32> to vector<1x21xf32>
    %20 = vector.broadcast %19 : vector<1x21xf32> to vector<8x21xf32>
    %21 = arith.mulf %18, %20 : vector<8x21xf32>
    %22 = arith.addf %16, %21 : vector<8x21xf32>
    %23 = vector.extract_strided_slice %3 {offsets = [3, 0, 0], sizes = [1, 8, 21], strides = [1, 1, 1]} : vector<4x8x21xf32> to vector<1x8x21xf32>
    %24 = vector.shape_cast %23 : vector<1x8x21xf32> to vector<8x21xf32>
    %25 = vector.extract_strided_slice %2 {offsets = [3, 0], sizes = [1, 21], strides = [1, 1]} : vector<8x21xf32> to vector<1x21xf32>
    %26 = vector.broadcast %25 : vector<1x21xf32> to vector<8x21xf32>
    %27 = arith.mulf %24, %26 : vector<8x21xf32>
    %28 = arith.addf %22, %27 : vector<8x21xf32>
    %c0_8 = arith.constant 0 : index
    %c0_9 = arith.constant 0 : index
    %c0_10 = arith.constant 0 : index
    %29 = vector.load %arg4[%c0_8, %c0_9, %c0_10] : memref<2x8x21xf32, #tpu.memory_space<vmem>>, vector<1x8x21xf32>
    %30 = vector.shape_cast %29 : vector<1x8x21xf32> to vector<8x21xf32>
    %31 = vector.shape_cast %28 : vector<8x21xf32> to vector<1x8x21xf32>
    tpu.vector_store %arg4[%c0_8, %c0_9, %c0_10], %31 {strides = array<i32>} : memref<2x8x21xf32, #tpu.memory_space<vmem>>, vector<1x8x21xf32>,
    %32 = vector.extract_strided_slice %3 {offsets = [0, 0, 0], sizes = [1, 8, 21], strides = [1, 1, 1]} : vector<4x8x21xf32> to vector<1x8x21xf32>
    %33 = vector.shape_cast %32 : vector<1x8x21xf32> to vector<8x21xf32>
    %34 = vector.extract_strided_slice %2 {offsets = [4, 0], sizes = [1, 21], strides = [1, 1]} : vector<8x21xf32> to vector<1x21xf32>
    %35 = vector.broadcast %34 : vector<1x21xf32> to vector<8x21xf32>
    %36 = arith.mulf %33, %35 : vector<8x21xf32>
    %37 = arith.addf %4, %36 : vector<8x21xf32>
    %38 = vector.extract_strided_slice %3 {offsets = [1, 0, 0], sizes = [1, 8, 21], strides = [1, 1, 1]} : vector<4x8x21xf32> to vector<1x8x21xf32>
    %39 = vector.shape_cast %38 : vector<1x8x21xf32> to vector<8x21xf32>
    %40 = vector.extract_strided_slice %2 {offsets = [5, 0], sizes = [1, 21], strides = [1, 1]} : vector<8x21xf32> to vector<1x21xf32>
    %41 = vector.broadcast %40 : vector<1x21xf32> to vector<8x21xf32>
    %42 = arith.mulf %39, %41 : vector<8x21xf32>
    %43 = arith.addf %37, %42 : vector<8x21xf32>
    %44 = vector.extract_strided_slice %3 {offsets = [2, 0, 0], sizes = [1, 8, 21], strides = [1, 1, 1]} : vector<4x8x21xf32> to vector<1x8x21xf32>
    %45 = vector.shape_cast %44 : vector<1x8x21xf32> to vector<8x21xf32>
    %46 = vector.extract_strided_slice %2 {offsets = [6, 0], sizes = [1, 21], strides = [1, 1]} : vector<8x21xf32> to vector<1x21xf32>
    %47 = vector.broadcast %46 : vector<1x21xf32> to vector<8x21xf32>
    %48 = arith.mulf %45, %47 : vector<8x21xf32>
    %49 = arith.addf %43, %48 : vector<8x21xf32>
    %50 = vector.extract_strided_slice %3 {offsets = [3, 0, 0], sizes = [1, 8, 21], strides = [1, 1, 1]} : vector<4x8x21xf32> to vector<1x8x21xf32>
    %51 = vector.shape_cast %50 : vector<1x8x21xf32> to vector<8x21xf32>
    %52 = vector.extract_strided_slice %2 {offsets = [7, 0], sizes = [1, 21], strides = [1, 1]} : vector<8x21xf32> to vector<1x21xf32>
    %53 = vector.broadcast %52 : vector<1x21xf32> to vector<8x21xf32>
    %54 = arith.mulf %51, %53 : vector<8x21xf32>
    %55 = arith.addf %49, %54 : vector<8x21xf32>
    %c1 = arith.constant 1 : index
    %c0_11 = arith.constant 0 : index
    %c0_12 = arith.constant 0 : index
    %56 = vector.load %arg4[%c1, %c0_11, %c0_12] : memref<2x8x21xf32, #tpu.memory_space<vmem>>, vector<1x8x21xf32>
    %57 = vector.shape_cast %56 : vector<1x8x21xf32> to vector<8x21xf32>
    %58 = vector.shape_cast %55 : vector<8x21xf32> to vector<1x8x21xf32>
    tpu.vector_store %arg4[%c1, %c0_11, %c0_12], %58 {strides = array<i32>} : memref<2x8x21xf32, #tpu.memory_space<vmem>>, vector<1x8x21xf32>,
    return
  }
}

</mosaic_0001>

<bundles_post_ra>
// kernel: linear_layer_forward.1
= control target key start
LH: loop header
LB: loop body
LE: loop exit
PB: predicated region body
PF: predicated region fallthrough
CT: control target
= control target key end

     0   :  { %vm24_vm0 = vcmask 1044480   ;;  %v207_v2 = vmov 0.0   ;;  %vm208_vm1 = vmmov 0   ;;  %vm20_vm2 = vcmask 39936   ;;  %s261_s0 = inlined_call_operand.vmem [shape: f32[8,5], index: 0, kind: input, shape index: {}]   ;;  %s262_s1 = inlined_call_operand.vmem [shape: f32[5,21], index: 1, kind: input, shape index: {}]   ;;  %s263_s2 = inlined_call_operand.vmem [shape: f32[4,8,21], index: 2, kind: input, shape index: {}]   ;;  %s264_s3 = inlined_call_operand.vmem [shape: f32[8,21], index: 3, kind: input, shape index: {}]   ;;  %s265_s4 = inlined_call_operand.hbm [shape: f32[2,8,21], index: 4, kind: output, shape index: {}]  }
   0x1   :  { %v19_v0 = vld [vmem:[%s262_s1] sm:$0x1f]  ;;  %175 = vmatprep.subr.mxu0 %v207_v2  ;;  %177 = vmatprep.mubr.msk.f32.mxu0 %vm208_vm1, %v207_v2 }
   0x2   :  { %v18_v1 = vld [vmem:[%s261_s0] sm:$0xff] }
   0x3   :  { %9 = vsyncpa [#allocation3], 0  ;;  %176 = vmatpush3.msk.msra.mxu0 %vm24_vm0, %v19_v0  ;;  %v103_v3 = vlaneseq  ;;  %v98_v12 = vld [vmem:[%s263_s2] sm:$0xff]  ;;  %v99_v19 = vld [vmem:[%s263_s2 + $0x8] sm:$0xff]  ;;  %vm127_vm3 = vcmask 171008  }
   0x4   :  { %178 = vmatmul.mubr.msk.f32.vlgmr.msra.gmra.mxu0 %vm20_vm2, %v18_v1  ;;  %v102_v20 = vld [vmem:[%s264_s3] sm:$0xff]  ;;  %v100_v26 = vld [vmem:[%s263_s2 + $0x10] sm:$0xff]  ;;  %v101_v33 = vld [vmem:[%s263_s2 + $0x18] sm:$0xff]  ;;  %s209_s3 = smov [#allocation2]  }
   0x5   :  { %v104_v4 = vshrl.u32 %v103_v3, 7  ;;  %s160_s27 = sshll.u32 %s209_s3, 4  ;;  %s161_s27 = int_to_ptr.vmem [resolvable:$true] %s160_s27 }
   0x6   :  { %s185_s28 = scalar_lea.vmem %s161_s27, 256  ;;  %p190_p1 = scmp.lt.s32.totalorder %s161_s27, %s161_s27 }
   0x7   :  { %v105_v5 = vsub.s32 0, %v104_v4  ;;  %v131_v6 = vsub.s32 4, %v104_v4  ;;  %v111_v7 = vsub.s32 1, %v104_v4  ;;  %v137_v8 = vsub.s32 5, %v104_v4  ;;  %p186_p0 = scmp.ne.s32.totalorder %s161_s27, %s185_s28  ;;  %p191_p2 = scmp.lt.s32.totalorder %s185_s28, %s185_s28 }
   0x8   :  { %v117_v9 = vsub.s32 2, %v104_v4  ;;  %v143_v10 = vsub.s32 6, %v104_v4  ;;  %v123_v13 = vsub.s32 3, %v104_v4  ;;  %v149_v14 = vsub.s32 7, %v104_v4 }
   0x9   :  { %p192_p3 = por %p191_p2, %p190_p1 }
   0xb   :  { %p193_p4 = pnand %p192_p3, %p186_p0 }
  0xc4   :  { %v94_v11 = vpop.f32.mrf.mxu0 }
  0xc5   :  { %v106_v15 = vrot.slane %v94_v11, %v105_v5  ;;  %v132_v16 = vrot.slane %v94_v11, %v131_v6  ;;  %v112_v17 = vrot.slane %v94_v11, %v111_v7  ;;  %v138_v21 = vrot.slane %v94_v11, %v137_v8 }
  0xc6   :  { %v179_v18 = vpop.f32.mrf.mxu0  ;;  %v118_v23 = vrot.slane %v94_v11, %v117_v9  ;;  %v144_v25 = vrot.slane %v94_v11, %v143_v10  ;;  %v124_v27 = vrot.slane %v94_v11, %v123_v13  ;;  %v150_v28 = vrot.slane %v94_v11, %v149_v14 }
  0xc7   :  { %v107_v22 = vmul.f32 %v106_v15, %v98_v12  ;;  %v133_v24 = vmul.f32 %v132_v16, %v98_v12  ;;  %v113_v30 = vmul.f32 %v112_v17, %v99_v19  ;;  %v139_v32 = vmul.f32 %v138_v21, %v99_v19 }
  0xc8   :  { %v119_v35 = vmul.f32 %v118_v23, %v100_v26  ;;  %v145_v37 = vmul.f32 %v144_v25, %v100_v26  ;;  %v125_v39 = vmul.f32 %v124_v27, %v101_v33  ;;  %v151_v41 = vmul.f32 %v150_v28, %v101_v33 }
  0xc9   :  { %v108_v29 = vadd.f32 %v107_v22, %v102_v20  ;;  %v134_v31 = vadd.f32 %v133_v24, %v102_v20 }
  0xcb   :  { %v114_v34 = vadd.f32 %v113_v30, %v108_v29  ;;  %v140_v36 = vadd.f32 %v139_v32, %v134_v31 }
  0xcd   :  { %v120_v38 = vadd.f32 %v119_v35, %v114_v34  ;;  %v146_v40 = vadd.f32 %v145_v37, %v140_v36 }
  0xcf   :  { %v126_v42 = vadd.f32 %v125_v39, %v120_v38  ;;  %v152_v43 = vadd.f32 %v151_v41, %v146_v40 }
  0xd1   :  { %128 = vst.msk [vmem:[#allocation2] sm:$0xff] %vm127_vm3, %v126_v42  ;;  %154 = vst.msk [vmem:[#allocation2 + $0x8] sm:$0xff] %vm127_vm3, %v152_v43 }
  0xd2   :  { %196 = shalt.err (!%p193_p4)
}
  0xd3   :  { %s210_s2 = smov 128   ;;  %s211_s29 = smov 8  }
  0xd4   :  { %166 = dma.vmem_to_hbm [thread:$0]  %s161_s27, 256, %s265_s4, [#allocation3], %s210_s2, %s210_s2, %s211_s29  }
  0xd5   :  { %205 = dma.done.wait [#allocation3], 256  }
  0xd6   :  { %206 = vsyncadd [#allocation3], 4294967040 }
  0xd7   :  { %170 = vsyncpa [#allocation3], 1 }

</bundles_post_ra>
